<compile_context>
chip_gen: v5e
topology: v5e:2x2
jax: 0.10.0
libtpu: 0.0.40
codegen_flags: <defaults>
</compile_context>

<pallas_src>
import jax
import jax.numpy as jnp
from jax.experimental import pallas as pl
from jax.experimental.pallas import tpu as pltpu


def _se_kernel(x_ref, w1_ref, w2_ref, w3_ref, w4_ref, o_ref):
    """One batch tile: global-average-pool, 4-layer bottleneck MLP, rescale.

    x_ref / o_ref: (bt, HW, C)   channels-last, C on the lane axis.
    wN_ref:        (in_features, out_features)  (pre-transposed nn.Linear).
    """
    x = x_ref[...]                                   # (bt, HW, C)

    # Squeeze: AdaptiveAvgPool2d(1) == mean over the spatial axis.
    y = jnp.mean(x, axis=1)                          # (bt, C)

    # Excitation: Linear -> ReLU (x3) -> Linear -> Sigmoid, once per batch tile.
    h = jnp.maximum(jnp.dot(y, w1_ref[...], preferred_element_type=jnp.float32), 0.0)
    h = jnp.maximum(jnp.dot(h, w2_ref[...], preferred_element_type=jnp.float32), 0.0)
    h = jnp.maximum(jnp.dot(h, w3_ref[...], preferred_element_type=jnp.float32), 0.0)
    s = jax.nn.sigmoid(jnp.dot(h, w4_ref[...], preferred_element_type=jnp.float32))  # (bt, C)

    # Scale: broadcast per-channel gate along the spatial (sublane) axis.
    o_ref[...] = (x * s[:, None, :]).astype(o_ref.dtype)


def _pick_batch_tile(b, hw, c, budget_bytes=8 * 1024 * 1024):
    # in + out tiles, each double-buffered by the pipeline -> ~4 copies, f32.
    per_sample = 4 * hw * c * 4
    return int(max(1, min(b, budget_bytes // max(per_sample, 1))))


@jax.jit
def se_layer(x_nchw, w1, w2, w3, w4):
    """x_nchw: (B, C, H, W) float32; wN: PyTorch nn.Linear weights (out, in)."""
    b, c, h, w = x_nchw.shape
    hw = h * w

    # Channels-last so C lands on the 128-lane axis inside the kernel.
    x_cl = jnp.transpose(x_nchw.reshape(b, c, hw), (0, 2, 1))          # (B, HW, C)

    # Pre-transpose weights once at trace time: kernel does y @ w directly.
    w1t, w2t, w3t, w4t = w1.T, w2.T, w3.T, w4.T

    bt = _pick_batch_tile(b, hw, c)
    grid = (pl.cdiv(b, bt),)

    x_spec = pl.BlockSpec((bt, hw, c), lambda i: (i, 0, 0))
    w_spec = lambda wt: pl.BlockSpec(wt.shape, lambda i: (0, 0))  # resident weights

    out_cl = pl.pallas_call(
        _se_kernel,
        out_shape=jax.ShapeDtypeStruct((b, hw, c), x_nchw.dtype),
        grid=grid,
        in_specs=[x_spec, w_spec(w1t), w_spec(w2t), w_spec(w3t), w_spec(w4t)],
        out_specs=x_spec,
        input_output_aliases={0: 0},
        compiler_params=pltpu.CompilerParams(
            dimension_semantics=("parallel",)),
    )(x_cl, w1t, w2t, w3t, w4t)

    return jnp.transpose(out_cl, (0, 2, 1)).reshape(b, c, h, w)


def _reference(x, w1, w2, w3, w4):
    y = jnp.mean(x, axis=(2, 3))
    h = jnp.maximum(y @ w1.T, 0.0)
    h = jnp.maximum(h @ w2.T, 0.0)
    h = jnp.maximum(h @ w3.T, 0.0)
    s = jax.nn.sigmoid(h @ w4.T)
    return x * s[:, :, None, None]


if __name__ == "__main__":
    key = jax.random.PRNGKey(0)
    B, C, H, W = 2, 32, 8, 8
    reduction = 16
    Cr = C // reduction  # 2

    kx, k1, k2, k3, k4 = jax.random.split(key, 5)
    x = jax.random.normal(kx, (B, C, H, W), dtype=jnp.float32)
    # nn.Linear weights are (out_features, in_features), bias=False.
    w1 = jax.random.normal(k1, (Cr, C), dtype=jnp.float32) * 0.1
    w2 = jax.random.normal(k2, (Cr, Cr), dtype=jnp.float32) * 0.1
    w3 = jax.random.normal(k3, (Cr, Cr), dtype=jnp.float32) * 0.1
    w4 = jax.random.normal(k4, (C, Cr), dtype=jnp.float32) * 0.1

    out = se_layer(x, w1, w2, w3, w4)
    jax.block_until_ready(out)

    ref = _reference(x, w1, w2, w3, w4)
    assert out.shape == x.shape and out.dtype == x.dtype
    assert jnp.allclose(out, ref, atol=1e-5, rtol=1e-5), "mismatch vs reference"

    print("KERNEL_OK")
</pallas_src>

<mosaic_0001>
module attributes {stable_mosaic.version = 11 : i64} {
  func.func @_se_kernel(%arg0: i32, %arg1: memref<2x64x32xf32, #tpu.memory_space<vmem>>, %arg2: memref<32x2xf32, #tpu.memory_space<vmem>>, %arg3: memref<2x2xf32, #tpu.memory_space<vmem>>, %arg4: memref<2x2xf32, #tpu.memory_space<vmem>>, %arg5: memref<2x32xf32, #tpu.memory_space<vmem>>, %arg6: memref<2x64x32xf32, #tpu.memory_space<vmem>>) attributes {dimension_semantics = [#tpu.dimension_semantics<parallel>], iteration_bounds = array<i64: 1>, scalar_prefetch = 0 : i64, scratch_operands = 0 : i64, tpu.core_type = #tpu.core_type<tc>, window_params = [{transform_indices = @transform_0, window_bounds = array<i64: 2, 64, 32>}, {pipeline_mode = #tpu.pipeline_mode<synchronous>, transform_indices = @transform_1, window_bounds = array<i64: 32, 2>}, {pipeline_mode = #tpu.pipeline_mode<synchronous>, transform_indices = @transform_2, window_bounds = array<i64: 2, 2>}, {pipeline_mode = #tpu.pipeline_mode<synchronous>, transform_indices = @transform_3, window_bounds = array<i64: 2, 2>}, {pipeline_mode = #tpu.pipeline_mode<synchronous>, transform_indices = @transform_4, window_bounds = array<i64: 2, 32>}, {transform_indices = @transform_5, window_bounds = array<i64: 2, 64, 32>}]} {
    %c0 = arith.constant 0 : index
    %c0_0 = arith.constant 0 : index
    %c0_1 = arith.constant 0 : index
    %0 = vector.load %arg1[%c0, %c0_0, %c0_1] : memref<2x64x32xf32, #tpu.memory_space<vmem>>, vector<2x64x32xf32>
    %cst = arith.constant dense<0.000000e+00> : vector<2x32xf32>
    %1 = vector.multi_reduction <add>, %0, %cst [1] : vector<2x64x32xf32> to vector<2x32xf32>
    %cst_2 = arith.constant 6.400000e+01 : f32
    %2 = vector.broadcast %cst_2 : f32 to vector<2x32xf32>
    %3 = arith.divf %1, %2 : vector<2x32xf32>
    %c0_3 = arith.constant 0 : index
    %c0_4 = arith.constant 0 : index
    %4 = vector.load %arg2[%c0_3, %c0_4] : memref<32x2xf32, #tpu.memory_space<vmem>>, vector<32x2xf32>
    %cst_5 = arith.constant dense<0.000000e+00> : vector<2x2xf32>
    %5 = tpu.matmul %3, %4, %cst_5 {dimension_numbers = #tpu.dot_dimension_numbers<[1], [0], [0], [1], [0, 0, 1, 1], [], []>} : vector<2x32xf32>, vector<32x2xf32>, vector<2x2xf32> -> vector<2x2xf32>
    %cst_6 = arith.constant 0.000000e+00 : f32
    %6 = vector.broadcast %cst_6 : f32 to vector<2x2xf32>
    %7 = arith.maximumf %5, %6 : vector<2x2xf32>
    %c0_7 = arith.constant 0 : index
    %c0_8 = arith.constant 0 : index
    %8 = vector.load %arg3[%c0_7, %c0_8] : memref<2x2xf32, #tpu.memory_space<vmem>>, vector<2x2xf32>
    %cst_9 = arith.constant dense<0.000000e+00> : vector<2x2xf32>
    %9 = tpu.matmul %7, %8, %cst_9 {dimension_numbers = #tpu.dot_dimension_numbers<[1], [0], [0], [1], [0, 0, 1, 1], [], []>} : vector<2x2xf32>, vector<2x2xf32>, vector<2x2xf32> -> vector<2x2xf32>
    %cst_10 = arith.constant 0.000000e+00 : f32
    %10 = vector.broadcast %cst_10 : f32 to vector<2x2xf32>
    %11 = arith.maximumf %9, %10 : vector<2x2xf32>
    %c0_11 = arith.constant 0 : index
    %c0_12 = arith.constant 0 : index
    %12 = vector.load %arg4[%c0_11, %c0_12] : memref<2x2xf32, #tpu.memory_space<vmem>>, vector<2x2xf32>
    %cst_13 = arith.constant dense<0.000000e+00> : vector<2x2xf32>
    %13 = tpu.matmul %11, %12, %cst_13 {dimension_numbers = #tpu.dot_dimension_numbers<[1], [0], [0], [1], [0, 0, 1, 1], [], []>} : vector<2x2xf32>, vector<2x2xf32>, vector<2x2xf32> -> vector<2x2xf32>
    %cst_14 = arith.constant 0.000000e+00 : f32
    %14 = vector.broadcast %cst_14 : f32 to vector<2x2xf32>
    %15 = arith.maximumf %13, %14 : vector<2x2xf32>
    %c0_15 = arith.constant 0 : index
    %c0_16 = arith.constant 0 : index
    %16 = vector.load %arg5[%c0_15, %c0_16] : memref<2x32xf32, #tpu.memory_space<vmem>>, vector<2x32xf32>
    %cst_17 = arith.constant dense<0.000000e+00> : vector<2x32xf32>
    %17 = tpu.matmul %15, %16, %cst_17 {dimension_numbers = #tpu.dot_dimension_numbers<[1], [0], [0], [1], [0, 0, 1, 1], [], []>} : vector<2x2xf32>, vector<2x32xf32>, vector<2x32xf32> -> vector<2x32xf32>
    %18 = arith.negf %17 : vector<2x32xf32>
    %19 = math.exp %18 : vector<2x32xf32>
    %cst_18 = arith.constant 1.000000e+00 : f32
    %20 = vector.broadcast %cst_18 : f32 to vector<2x32xf32>
    %21 = arith.addf %20, %19 : vector<2x32xf32>
    %22 = arith.divf %20, %21 : vector<2x32xf32>
    %23 = vector.shape_cast %22 : vector<2x32xf32> to vector<2x1x32xf32>
    %24 = vector.broadcast %23 : vector<2x1x32xf32> to vector<2x64x32xf32>
    %25 = arith.mulf %0, %24 : vector<2x64x32xf32>
    %c0_19 = arith.constant 0 : index
    %c0_20 = arith.constant 0 : index
    %c0_21 = arith.constant 0 : index
    %26 = vector.load %arg6[%c0_19, %c0_20, %c0_21] : memref<2x64x32xf32, #tpu.memory_space<vmem>>, vector<2x64x32xf32>
    tpu.vector_store %arg6[%c0_19, %c0_20, %c0_21], %25 {strides = array<i32>} : memref<2x64x32xf32, #tpu.memory_space<vmem>>, vector<2x64x32xf32>,
    return
  }
  func.func @transform_0(%arg0: i32) -> (i32, i32, i32) {
    %c0_i32 = arith.constant 0 : i32
    %c0_i32_0 = arith.constant 0 : i32
    %c0_i32_1 = arith.constant 0 : i32
    return %arg0, %c0_i32, %c0_i32_0 : i32, i32, i32
  }
  func.func @transform_1(%arg0: i32) -> (i32, i32) {
    %c0_i32 = arith.constant 0 : i32
    %c0_i32_0 = arith.constant 0 : i32
    %c0_i32_1 = arith.constant 0 : i32
    return %c0_i32, %c0_i32_0 : i32, i32
  }
  func.func @transform_2(%arg0: i32) -> (i32, i32) {
    %c0_i32 = arith.constant 0 : i32
    %c0_i32_0 = arith.constant 0 : i32
    %c0_i32_1 = arith.constant 0 : i32
    return %c0_i32, %c0_i32_0 : i32, i32
  }
  func.func @transform_3(%arg0: i32) -> (i32, i32) {
    %c0_i32 = arith.constant 0 : i32
    %c0_i32_0 = arith.constant 0 : i32
    %c0_i32_1 = arith.constant 0 : i32
    return %c0_i32, %c0_i32_0 : i32, i32
  }
  func.func @transform_4(%arg0: i32) -> (i32, i32) {
    %c0_i32 = arith.constant 0 : i32
    %c0_i32_0 = arith.constant 0 : i32
    %c0_i32_1 = arith.constant 0 : i32
    return %c0_i32, %c0_i32_0 : i32, i32
  }
  func.func @transform_5(%arg0: i32) -> (i32, i32, i32) {
    %c0_i32 = arith.constant 0 : i32
    %c0_i32_0 = arith.constant 0 : i32
    %c0_i32_1 = arith.constant 0 : i32
    return %arg0, %c0_i32, %c0_i32_0 : i32, i32, i32
  }
}

</mosaic_0001>

<bundles_post_ra>
// kernel: se_layer.1
= control target key start
LH: loop header
LB: loop body
LE: loop exit
PB: predicated region body
PF: predicated region fallthrough
CT: control target
= control target key end

     0   :  { %vm36_vm0 = vcmask 261120   ;;  %v280_v9 = vmov 64.0   ;;  %vm94_vm2 = vcmask 1041409   ;;  %vm124_vm3 = vcmask 1041408   ;;  %s525_s1 = inlined_call_operand.vmem [shape: f32[32,2], index: 1, kind: input, shape index: {}]   ;;  %s526_s0 = inlined_call_operand.vmem [shape: f32[2,64,32], index: 0, kind: input, shape index: {}, may-alias: {0,5}]   ;;  %s527_s2 = inlined_call_operand.vmem [shape: f32[2,2], index: 2, kind: input, shape index: {}]   ;;  %s528_s3 = inlined_call_operand.vmem [shape: f32[2,2], index: 3, kind: input, shape index: {}]   ;;  %s529_s4 = inlined_call_operand.vmem [shape: f32[2,32], index: 4, kind: input, shape index: {}]   ;;  %s530_s5 = inlined_call_operand.vmem [shape: f32[2,64,32], index: 5, kind: output, shape index: {}, may-alias: {0,5}]  }
   0x1   :  { %v91_v0 = vld [vmem:[%s525_s1 + $0x18] sm:$0xff]  ;;  %v90_v1 = vld [vmem:[%s525_s1 + $0x10] sm:$0xff]  ;;  %v320_v2 = vld [vmem:[%s526_s0] sm:$0xff]  ;;  %274 = vrcp.f32 %v280_v9  ;;  %vm120_vm4 = vcmask 15360  }
   0x2   :  { %110 = vmatpush.msra.mxu0 %v91_v0  ;;  %v325_v3 = vld [vmem:[%s526_s0 + $0x8] sm:$0xff]  ;;  %v333_v5 = vld [vmem:[%s526_s0 + $0x10] sm:$0xff]  ;;  %v338_v6 = vld [vmem:[%s526_s0 + $0x18] sm:$0xff]  ;;  %v37_v7 = vsel %vm36_vm0, %v320_v2, 0.0 }
   0x3   :  { %v89_v4 = vld [vmem:[%s525_s1 + $0x8] sm:$0xff]  ;;  %v38_v8 = vsel %vm36_vm0, %v325_v3, 0.0  ;;  %v88_v10 = vld [vmem:[%s525_s1] sm:$0xff]  ;;  %v40_v13 = vsel %vm36_vm0, %v333_v5, 0.0  ;;  %v367_v16 = vld [vmem:[%s526_s0 + $0x50] sm:$0xff]  ;;  %v42_v17 = vsel %vm36_vm0, %v338_v6, 0.0 }
   0x4   :  { %111 = vmatpush.msra.mxu0 %v90_v1  ;;  %v350_v11 = vld [vmem:[%s526_s0 + $0x20] sm:$0xff]  ;;  %v39_v12 = vadd.f32 %v38_v8, %v37_v7  ;;  %v362_v15 = vld [vmem:[%s526_s0 + $0x48] sm:$0xff]  ;;  %v379_v19 = vld [vmem:[%s526_s0 + $0x58] sm:$0xff]  ;;  %v61_v23 = vsel %vm36_vm0, %v367_v16, 0.0 }
   0x5   :  { %v357_v14 = vld [vmem:[%s526_s0 + $0x40] sm:$0xff]  ;;  %v374_v18 = vld [vmem:[%s526_s0 + $0x28] sm:$0xff]  ;;  %v59_v22 = vsel %vm36_vm0, %v362_v15, 0.0  ;;  %v44_v25 = vsel %vm36_vm0, %v350_v11, 0.0  ;;  %v397_v27 = vld [vmem:[%s526_s0 + $0x30] sm:$0xff]  ;;  %v63_v29 = vsel %vm36_vm0, %v379_v19, 0.0 }
   0x6   :  { %112 = vmatpush.msra.mxu0 %v89_v4  ;;  %v41_v20 = vadd.f32 %v40_v13, %v39_v12  ;;  %v58_v21 = vsel %vm36_vm0, %v357_v14, 0.0  ;;  %v390_v24 = vld [vmem:[%s526_s0 + $0x60] sm:$0xff]  ;;  %v404_v31 = vld [vmem:[%s526_s0 + $0x68] sm:$0xff]  ;;  %v46_v32 = vsel %vm36_vm0, %v374_v18, 0.0  ;;  %v411_v34 = vld [vmem:[%s526_s0 + $0x38] sm:$0xff]  ;;  %v48_v38 = vsel %vm36_vm0, %v397_v27, 0.0 }
   0x7   :  { %v60_v26 = vadd.f32 %v59_v22, %v58_v21  ;;  %v275_v30 = vpop.eup %274  ;;  %v65_v36 = vsel %vm36_vm0, %v390_v24, 0.0  ;;  %v418_v37 = vld [vmem:[%s526_s0 + $0x70] sm:$0xff]  ;;  %v67_v41 = vsel %vm36_vm0, %v404_v31, 0.0  ;;  %v427_v43 = vld [vmem:[%s526_s0 + $0x78] sm:$0xff]  ;;  %v50_v44 = vsel %vm36_vm0, %v411_v34, 0.0 }
   0x8   :  { %113 = vmatpush.msra.mxu0 %v88_v10  ;;  %v43_v28 = vadd.f32 %v42_v17, %v41_v20  ;;  %v80_v42 = vmul.f32 64.0, %v275_v30  ;;  %v69_v47 = vsel %vm36_vm0, %v418_v37, 0.0  ;;  %v71_v50 = vsel %vm36_vm0, %v427_v43, 0.0  ;;  %v119_v13 = vld [vmem:[%s527_s2] sm:$0x3] }
   0x9   :  { %v62_v33 = vadd.f32 %v61_v23, %v60_v26  ;;  %vm84_vm1 = vweird.f32 %v275_v30  ;;  %266 = vmatpush.msk.msra.mxu1 %vm124_vm3, %v119_v13  ;;  %v149_v21 = vld [vmem:[%s528_s3] sm:$0x3] }
   0xa   :  { %v45_v35 = vadd.f32 %v44_v25, %v43_v28  ;;  %v81_v51 = vsub.f32 1.0, %v80_v42  ;;  %268 = vmatpush.msk.msra.mxu2 %vm124_vm3, %v149_v21  ;;  %v177_v25 = vld [vmem:[%s529_s4] sm:$0x3] }
   0xb   :  { %v64_v39 = vadd.f32 %v63_v29, %v62_v33  ;;  %270 = vmatpush.msk.msra.mxu3 %vm124_vm3, %v177_v25 }
   0xc   :  { %v47_v40 = vadd.f32 %v46_v32, %v45_v35  ;;  %v82_v56 = vmul.f32 %v275_v30, %v81_v51 }
   0xd   :  { %v66_v45 = vadd.f32 %v65_v36, %v64_v39 }
   0xe   :  { %v49_v46 = vadd.f32 %v48_v38, %v47_v40  ;;  %v83_v61 = vadd.f32 %v275_v30, %v82_v56 }
   0xf   :  { %v68_v48 = vadd.f32 %v67_v41, %v66_v45 }
  0x10   :  { %v51_v49 = vadd.f32 %v50_v44, %v49_v46  ;;  %v85_v4 = vsel %vm84_vm1, %v275_v30, %v83_v61 }
  0x11   :  { %v70_v52 = vadd.f32 %v69_v47, %v68_v48 }
  0x12   :  { %v52_v53 = vrot.slane %v51_v49, 4 }
  0x13   :  { %v72_v54 = vadd.f32 %v71_v50, %v70_v52 }
  0x14   :  { %v53_v55 = vadd.f32 %v52_v53, %v51_v49 }
  0x15   :  { %v73_v57 = vrot.slane %v72_v54, 4 }
  0x16   :  { %v54_v58 = vrot.slane %v53_v55, 2 }
  0x17   :  { %v74_v59 = vadd.f32 %v73_v57, %v72_v54 }
  0x18   :  { %v55_v60 = vadd.f32 %v54_v58, %v53_v55 }
  0x19   :  { %v75_v62 = vrot.slane %v74_v59, 2 }
  0x1a   :  { %v56_v63 = vrot.slane %v55_v60, 1 }
  0x1b   :  { %v76_v0 = vadd.f32 %v75_v62, %v74_v59 }
  0x1c   :  { %v57_v1 = vadd.f32 %v56_v63, %v55_v60 }
  0x1d   :  { %v77_v7 = vrot.slane %v76_v0, 1 }
  0x1e   :  { %v86_v9 = vmul.f32 %v85_v4, %v57_v1 }
  0x1f   :  { %v78_v8 = vadd.f32 %v77_v7, %v76_v0 }
  0x21   :  { %v87_v10 = vmul.f32 %v85_v4, %v78_v8 }
  0x23   :  { %v95_v12 = vsel %vm94_vm2, %v87_v10, %v86_v9 }
  0x24   :  { %265 = vmatmul.msk.f32.vlgmr.msra.gmra.mxu0 %vm36_vm0, %v95_v12 }
  0xa1   :  { %v115_v17 = vpop.f32.mrf.mxu0 }
  0xa2   :  { %v118_v20 = vmax.f32 %v115_v17, 0.0 }
  0xa4   :  { %267 = vmatmul.msk.f32.vlgmr.msra.gmra.mxu1 %vm120_vm4, %v118_v20 }
 0x121   :  { %v145_v22 = vpop.f32.mrf.mxu1 }
 0x122   :  { %v148_v23 = vmax.f32 %v145_v22, 0.0 }
 0x124   :  { %269 = vmatmul.msk.f32.vlgmr.msra.gmra.mxu2 %vm120_vm4, %v148_v23 }
 0x1a7   :  { %v173_v26 = vpop.f32.mrf.mxu2 }
 0x1a8   :  { %v176_v28 = vmax.f32 %v173_v26, 0.0 }
 0x1aa   :  { %271 = vmatmul.msk.f32.vlgmr.msra.gmra.mxu3 %vm120_vm4, %v176_v28 }
 0x22d   :  { %v201_v29 = vpop.f32.mrf.mxu3 }
 0x22e   :  { %v272_v30 = vmul.f32 -1.442695, %v201_v29 }
 0x230   :  { %276 = vpow2.f32 %v272_v30 }
 0x236   :  { %v277_v32 = vpop.eup %276 }
 0x237   :  { %v207_v33 = vadd.f32 1.0, %v277_v32 }
 0x239   :  { %278 = vrcp.f32 %v207_v33  ;;  %v219_v39 = vand.u32 2147483648, %v207_v33  ;;  %v217_v41 = vand.u32 2147483647, %v207_v33  ;;  %vm213_vm6 = vweird.f32 %v207_v33 }
 0x23b   :  { %v220_v44 = vor.u32 1.1754944e-38, %v219_v39  ;;  %vm218_vm8 = vcmp.eq.f32.partialorder %v217_v41, 8.507059e+37 }
 0x23f   :  { %v279_v35 = vpop.eup %278 }
 0x240   :  { %v209_v36 = vmul.f32 %v279_v35, %v207_v33  ;;  %vm214_vm5 = vweird.f32 %v279_v35 }
 0x241   :  { %vm215_vm7 = vmor %vm213_vm6, %vm214_vm5 }
 0x242   :  { %v210_v38 = vsub.f32 1.0, %v209_v36 }
 0x244   :  { %v211_v40 = vmul.f32 %v279_v35, %v210_v38 }
 0x246   :  { %v212_v42 = vadd.f32 %v279_v35, %v211_v40 }
 0x248   :  { %v216_v45 = vsel %vm215_vm7, %v279_v35, %v212_v42 }
 0x249   :  { %v221_v46 = vsel %vm218_vm8, %v220_v44, %v216_v45 }
 0x24a   :  { %v224_v47 = vrot.slane %v221_v46, 1  ;;  %v225_v48 = vperm.slane %v221_v46, 0 }
 0x24c   :  { %v229_v49 = vmul.f32 %v225_v48, %v320_v2  ;;  %v230_v50 = vmul.f32 %v225_v48, %v325_v3  ;;  %v231_v51 = vmul.f32 %v225_v48, %v333_v5  ;;  %v232_v52 = vmul.f32 %v225_v48, %v338_v6 }
 0x24d   :  { %v226_v53 = vperm.slane %v224_v47, 0  ;;  %v233_v54 = vmul.f32 %v225_v48, %v350_v11  ;;  %v234_v55 = vmul.f32 %v225_v48, %v374_v18  ;;  %v235_v2 = vmul.f32 %v225_v48, %v397_v27 }
 0x24e   :  { %245 = vst.msk [vmem:[%s530_s5] sm:$0xff] %vm36_vm0, %v229_v49  ;;  %v236_v3 = vmul.f32 %v225_v48, %v411_v34 }
 0x24f   :  { %246 = vst.msk [vmem:[%s530_s5 + $0x8] sm:$0xff] %vm36_vm0, %v230_v50  ;;  %v237_v5 = vmul.f32 %v226_v53, %v357_v14  ;;  %v238_v6 = vmul.f32 %v226_v53, %v362_v15  ;;  %v239_v11 = vmul.f32 %v226_v53, %v367_v16  ;;  %v240_v14 = vmul.f32 %v226_v53, %v379_v19 }
 0x250   :  { %247 = vst.msk [vmem:[%s530_s5 + $0x10] sm:$0xff] %vm36_vm0, %v231_v51  ;;  %v241_v15 = vmul.f32 %v226_v53, %v390_v24  ;;  %v242_v16 = vmul.f32 %v226_v53, %v404_v31  ;;  %v243_v18 = vmul.f32 %v226_v53, %v418_v37  ;;  %v244_v19 = vmul.f32 %v226_v53, %v427_v43 }
 0x251   :  { %248 = vst.msk [vmem:[%s530_s5 + $0x18] sm:$0xff] %vm36_vm0, %v232_v52 }
 0x252   :  { %249 = vst.msk [vmem:[%s530_s5 + $0x20] sm:$0xff] %vm36_vm0, %v233_v54 }
 0x253   :  { %250 = vst.msk [vmem:[%s530_s5 + $0x28] sm:$0xff] %vm36_vm0, %v234_v55 }
 0x254   :  { %251 = vst.msk [vmem:[%s530_s5 + $0x30] sm:$0xff] %vm36_vm0, %v235_v2 }
 0x255   :  { %252 = vst.msk [vmem:[%s530_s5 + $0x38] sm:$0xff] %vm36_vm0, %v236_v3 }
 0x256   :  { %253 = vst.msk [vmem:[%s530_s5 + $0x40] sm:$0xff] %vm36_vm0, %v237_v5 }
 0x257   :  { %254 = vst.msk [vmem:[%s530_s5 + $0x48] sm:$0xff] %vm36_vm0, %v238_v6 }
 0x258   :  { %255 = vst.msk [vmem:[%s530_s5 + $0x50] sm:$0xff] %vm36_vm0, %v239_v11 }
 0x259   :  { %256 = vst.msk [vmem:[%s530_s5 + $0x58] sm:$0xff] %vm36_vm0, %v240_v14 }
 0x25a   :  { %257 = vst.msk [vmem:[%s530_s5 + $0x60] sm:$0xff] %vm36_vm0, %v241_v15 }
 0x25b   :  { %258 = vst.msk [vmem:[%s530_s5 + $0x68] sm:$0xff] %vm36_vm0, %v242_v16 }
 0x25c   :  { %259 = vst.msk [vmem:[%s530_s5 + $0x70] sm:$0xff] %vm36_vm0, %v243_v18 }
 0x25d   :  { %260 = vst.msk [vmem:[%s530_s5 + $0x78] sm:$0xff] %vm36_vm0, %v244_v19 }

</bundles_post_ra>
